<compile_context>
chip_gen: v6e
topology: v6e:2x2x1
jax: 0.10.0
libtpu: 0.0.40
codegen_flags: <defaults>
</compile_context>

<pallas_src>
import functools

import jax
import jax.numpy as jnp
from jax.experimental import pallas as pl
from jax.experimental.pallas import tpu as pltpu


def _round_up(x, m):
    return ((x + m - 1) // m) * m


def _num_tensorcores():
    """2 on multi-TensorCore chips (v7x), else 1.  Detection failure -> 1."""
    try:
        kind = jax.devices()[0].device_kind.lower()
    except Exception:
        return 1
    return 2 if ("v7" in kind or "7x" in kind) else 1


def _focal_loss_kernel(x_ref, t_ref, out_ref, *, gamma, hw_valid, tile,
                       num_tiles, tiles_per_core, mask_tail):
    core = pl.program_id(0)
    n_id = pl.program_id(1)
    j_id = pl.program_id(2)

    # Zero this core's resident lane-wide accumulator on its first grid step.
    @pl.when((n_id == 0) & (j_id == 0))
    def _():
        out_ref[...] = jnp.zeros_like(out_ref)

    x = x_ref[...].astype(jnp.float32)            # (BN, C, TILE)
    t = t_ref[...]                                # (BN, 1, TILE) int32

    # Numerically-stable log-softmax over the class (sublane) axis.
    m = jnp.max(x, axis=1, keepdims=True)         # (BN, 1, TILE)
    z = x - m                                     # (BN, C, TILE)
    sum_e = jnp.sum(jnp.exp(z), axis=1, keepdims=True)        # (BN, 1, TILE)

    # Target-class shifted logit via select-then-reduce (no one-hot multiply).
    cls = jax.lax.broadcasted_iota(jnp.int32, x.shape, 1)
    z_t = jnp.sum(jnp.where(cls == t, z, 0.0), axis=1, keepdims=True)

    ce = jnp.log(sum_e) - z_t                     # (BN, 1, TILE)
    pt = jnp.exp(-ce)                             # softmax prob of target class

    g = float(gamma)
    if g == float(int(g)) and g >= 0:
        gi = int(g)
        if gi == 0:
            w = jnp.ones_like(ce)
        else:
            base = 1.0 - pt
            w = base
            for _ in range(gi - 1):               # gamma=2 -> base * base
                w = w * base
    else:
        w = jnp.maximum(1.0 - pt, 0.0) ** jnp.float32(g)

    focal = jnp.sum(w * ce, axis=0)               # (1, TILE): reduce batch block

    if mask_tail:
        # Only the very last spatial tile can contain padding columns.
        gidx = core * tiles_per_core + j_id
        is_tail = gidx == (num_tiles - 1)

        @pl.when(is_tail)
        def _():
            col = (num_tiles - 1) * tile + jax.lax.broadcasted_iota(
                jnp.int32, focal.shape, 1)
            out_ref[0:1, :] += jnp.where(col < hw_valid, focal, 0.0)

        @pl.when(jnp.logical_not(is_tail))
        def _():
            out_ref[0:1, :] += focal
    else:
        out_ref[0:1, :] += focal


def focal_loss(inputs_nchw, targets_nhw, gamma=2.0, block_bytes=1 << 20):
    """FocalLoss(alpha=None, gamma, reduction='mean').forward equivalent."""
    # TODO(synk): alpha (per-class weights) and F.cross_entropy's
    # ignore_index=-100 are not implemented (module defaults assumed).
    n, c, h, w = inputs_nchw.shape
    hw = h * w
    total = n * hw

    # Lane tile along the spatial axis: multiple of 128, sized so one logits
    # block is ~block_bytes of f32 (big DMAs, amortized per-step overhead).
    hw_128 = _round_up(hw, 128)
    tile_budget = max(128, (block_bytes // (4 * max(c, 1))) // 128 * 128)
    tile = min(hw_128, tile_budget)
    num_tiles = (hw + tile - 1) // tile

    # If a whole image's spatial extent fits in one tile, block several batch
    # images per step (divisor of N -> no ragged batch blocks).
    bn = 1
    if num_tiles == 1:
        max_bn = max(1, block_bytes // (4 * max(c, 1) * tile))
        for d in range(min(n, max_bn), 0, -1):
            if n % d == 0:
                bn = d
                break

    # Split the spatial-tile reduction across TensorCores only where it buys
    # real parallelism (2-TC chips) and only when it divides evenly.
    num_cores = 2 if (num_tiles >= 2 and num_tiles % 2 == 0
                      and _num_tensorcores() >= 2) else 1
    tiles_per_core = num_tiles // num_cores

    # NCHW consumed natively; these reshapes are free (contiguous).
    x = inputs_nchw.reshape(n, c, hw)
    t = targets_nhw.reshape(n, 1, hw).astype(jnp.int32)

    mask_tail = (hw % tile) != 0

    kernel = functools.partial(
        _focal_loss_kernel, gamma=float(gamma), hw_valid=hw, tile=tile,
        num_tiles=num_tiles, tiles_per_core=tiles_per_core,
        mask_tail=mask_tail)

    partial_sums = pl.pallas_call(
        kernel,
        out_shape=jax.ShapeDtypeStruct((num_cores * 8, tile), jnp.float32),
        grid_spec=pltpu.PrefetchScalarGridSpec(
            num_scalar_prefetch=0,
            grid=(num_cores, n // bn, tiles_per_core),
            in_specs=[
                pl.BlockSpec(
                    (bn, c, tile),
                    lambda cc, nn, jj: (nn, 0, cc * tiles_per_core + jj)),
                pl.BlockSpec(
                    (bn, 1, tile),
                    lambda cc, nn, jj: (nn, 0, cc * tiles_per_core + jj)),
            ],
            out_specs=pl.BlockSpec((8, tile), lambda cc, nn, jj: (cc, 0)),
        ),
        compiler_params=pltpu.CompilerParams(
            dimension_semantics=("parallel", "arbitrary", "arbitrary"),
            vmem_limit_bytes=32 * 1024 * 1024),
    )(x, t)

    return jnp.sum(partial_sums) / jnp.float32(total)


def _reference_focal_loss(inputs_nchw, targets_nhw, gamma=2.0):
    # Pure-JAX reference of the PyTorch forward for verification.
    logp = jax.nn.log_softmax(inputs_nchw.astype(jnp.float32), axis=1)  # (N,C,H,W)
    t = targets_nhw.astype(jnp.int32)
    ce = -jnp.take_along_axis(logp, t[:, None, :, :], axis=1)[:, 0]     # (N,H,W)
    pt = jnp.exp(-ce)
    return jnp.mean((1.0 - pt) ** gamma * ce)


if __name__ == "__main__":
    key = jax.random.PRNGKey(0)
    k1, k2 = jax.random.split(key)

    n, c, h, w = 2, 4, 16, 16
    inputs = jax.random.normal(k1, (n, c, h, w), dtype=jnp.float32)
    targets = jax.random.randint(k2, (n, h, w), 0, c, dtype=jnp.int32)

    loss = focal_loss(inputs, targets, gamma=2.0)
    loss = jax.block_until_ready(loss)

    ref = _reference_focal_loss(inputs, targets, gamma=2.0)
    assert jnp.allclose(loss, ref, rtol=1e-5, atol=1e-6), (loss, ref)

    print("KERNEL_OK")
</pallas_src>

<mosaic_0001>
module attributes {stable_mosaic.version = 11 : i64} {
  func.func @_focal_loss_kernel(%arg0: i32, %arg1: i32, %arg2: i32, %arg3: memref<2x4x256xf32, #tpu.memory_space<vmem>>, %arg4: memref<2x1x256xi32, #tpu.memory_space<vmem>>, %arg5: memref<8x256xf32, #tpu.memory_space<vmem>>) attributes {dimension_semantics = [#tpu.dimension_semantics<parallel>, #tpu.dimension_semantics<arbitrary>, #tpu.dimension_semantics<arbitrary>], iteration_bounds = array<i64: 1, 1, 1>, scalar_prefetch = 0 : i64, scratch_operands = 0 : i64, tpu.core_type = #tpu.core_type<tc>, window_params = [{transform_indices = @transform_0, window_bounds = array<i64: 2, 4, 256>}, {transform_indices = @transform_1, window_bounds = array<i64: 2, 1, 256>}, {transform_indices = @transform_2, window_bounds = array<i64: 8, 256>}]} {
    %c0_i32 = arith.constant 0 : i32
    %0 = arith.cmpi eq, %arg1, %c0_i32 : i32
    %c0_i32_0 = arith.constant 0 : i32
    %1 = arith.cmpi eq, %arg2, %c0_i32_0 : i32
    %2 = arith.andi %0, %1 : i1
    %3 = arith.extui %2 : i1 to i32
    %c0_i32_1 = arith.constant 0 : i32
    %4 = arith.cmpi ne, %3, %c0_i32_1 : i32
    scf.if %4 {
      %cst_17 = arith.constant 0.000000e+00 : f32
      %34 = vector.broadcast %cst_17 : f32 to vector<8x256xf32>
      %c0_18 = arith.constant 0 : index
      %c0_19 = arith.constant 0 : index
      %35 = vector.load %arg5[%c0_18, %c0_19] : memref<8x256xf32, #tpu.memory_space<vmem>>, vector<8x256xf32>
      tpu.vector_store %arg5[%c0_18, %c0_19], %34 {strides = array<i32>} : memref<8x256xf32, #tpu.memory_space<vmem>>, vector<8x256xf32>,
    } else {
    }
    %c0 = arith.constant 0 : index
    %c0_2 = arith.constant 0 : index
    %c0_3 = arith.constant 0 : index
    %5 = vector.load %arg3[%c0, %c0_2, %c0_3] : memref<2x4x256xf32, #tpu.memory_space<vmem>>, vector<2x4x256xf32>
    %c0_4 = arith.constant 0 : index
    %c0_5 = arith.constant 0 : index
    %c0_6 = arith.constant 0 : index
    %6 = vector.load %arg4[%c0_4, %c0_5, %c0_6] : memref<2x1x256xi32, #tpu.memory_space<vmem>>, vector<2x1x256xi32>
    %cst = arith.constant dense<0xFF800000> : vector<2x256xf32>
    %7 = vector.multi_reduction <maximumf>, %5, %cst [1] : vector<2x4x256xf32> to vector<2x256xf32>
    %8 = vector.shape_cast %7 : vector<2x256xf32> to vector<2x1x256xf32>
    %9 = vector.broadcast %8 : vector<2x1x256xf32> to vector<2x4x256xf32>
    %10 = arith.subf %5, %9 : vector<2x4x256xf32>
    %11 = math.exp %10 : vector<2x4x256xf32>
    %cst_7 = arith.constant dense<0.000000e+00> : vector<2x256xf32>
    %12 = vector.multi_reduction <add>, %11, %cst_7 [1] : vector<2x4x256xf32> to vector<2x256xf32>
    %13 = vector.shape_cast %12 : vector<2x256xf32> to vector<2x1x256xf32>
    %14 = tpu.iota {dimensions = array<i32: 1>} : vector<2x4x256xi32>
    %15 = vector.broadcast %6 : vector<2x1x256xi32> to vector<2x4x256xi32>
    %16 = arith.cmpi eq, %14, %15 : vector<2x4x256xi32>
    %cst_8 = arith.constant 0.000000e+00 : f32
    %17 = vector.broadcast %cst_8 : f32 to vector<2x4x256xf32>
    %18 = arith.select %16, %10, %17 : vector<2x4x256xi1>, vector<2x4x256xf32>
    %cst_9 = arith.constant dense<0.000000e+00> : vector<2x256xf32>
    %19 = vector.multi_reduction <add>, %18, %cst_9 [1] : vector<2x4x256xf32> to vector<2x256xf32>
    %20 = vector.shape_cast %19 : vector<2x256xf32> to vector<2x1x256xf32>
    %21 = math.log %13 : vector<2x1x256xf32>
    %22 = arith.subf %21, %20 : vector<2x1x256xf32>
    %cst_10 = arith.constant 0.000000e+00 : f32
    %23 = vector.broadcast %cst_10 : f32 to vector<2x1x256xf32>
    %24 = arith.subf %23, %22 : vector<2x1x256xf32>
    %25 = math.exp %24 : vector<2x1x256xf32>
    %cst_11 = arith.constant 1.000000e+00 : f32
    %26 = vector.broadcast %cst_11 : f32 to vector<2x1x256xf32>
    %27 = arith.subf %26, %25 : vector<2x1x256xf32>
    %28 = arith.mulf %27, %27 : vector<2x1x256xf32>
    %29 = arith.mulf %28, %22 : vector<2x1x256xf32>
    %cst_12 = arith.constant dense<0.000000e+00> : vector<1x256xf32>
    %30 = vector.multi_reduction <add>, %29, %cst_12 [0] : vector<2x1x256xf32> to vector<1x256xf32>
    %c0_13 = arith.constant 0 : index
    %c0_14 = arith.constant 0 : index
    %31 = vector.load %arg5[%c0_13, %c0_14] : memref<8x256xf32, #tpu.memory_space<vmem>>, vector<1x256xf32>
    %32 = arith.addf %31, %30 : vector<1x256xf32>
    %c0_15 = arith.constant 0 : index
    %c0_16 = arith.constant 0 : index
    %33 = vector.load %arg5[%c0_15, %c0_16] : memref<8x256xf32, #tpu.memory_space<vmem>>, vector<1x256xf32>
    tpu.vector_store %arg5[%c0_15, %c0_16], %32 {strides = array<i32>} : memref<8x256xf32, #tpu.memory_space<vmem>>, vector<1x256xf32>,
    return
  }
  func.func @transform_0(%arg0: i32, %arg1: i32, %arg2: i32) -> (i32, i32, i32) {
    %c1_i32 = arith.constant 1 : i32
    %0 = arith.muli %arg0, %c1_i32 : i32
    %1 = arith.addi %0, %arg2 : i32
    %c0_i32 = arith.constant 0 : i32
    %c0_i32_0 = arith.constant 0 : i32
    return %arg1, %c0_i32, %1 : i32, i32, i32
  }
  func.func @transform_1(%arg0: i32, %arg1: i32, %arg2: i32) -> (i32, i32, i32) {
    %c1_i32 = arith.constant 1 : i32
    %0 = arith.muli %arg0, %c1_i32 : i32
    %1 = arith.addi %0, %arg2 : i32
    %c0_i32 = arith.constant 0 : i32
    %c0_i32_0 = arith.constant 0 : i32
    return %arg1, %c0_i32, %1 : i32, i32, i32
  }
  func.func @transform_2(%arg0: i32, %arg1: i32, %arg2: i32) -> (i32, i32) {
    %c0_i32 = arith.constant 0 : i32
    %c0_i32_0 = arith.constant 0 : i32
    return %arg0, %c0_i32 : i32, i32
  }
}

</mosaic_0001>

<bundles_post_ra>
// kernel: tpu_custom_call.1
= control target key start
LH: loop header
LB: loop body
LE: loop exit
PB: predicated region body
PF: predicated region fallthrough
CT: control target
= control target key end

     0   :  { %7 = vsyncpa [#allocation3], 0  ;;  %s440_s0 = inlined_call_operand.hbm [shape: f32[2,4,256], index: 0, kind: input, shape index: {}]   ;;  %s441_s1 = inlined_call_operand.hbm [shape: s32[2,1,256], index: 1, kind: input, shape index: {}]   ;;  %s442_s2 = inlined_call_operand.hbm [shape: f32[8,256], index: 2, kind: output, shape index: {}]  }
   0x1   :  { %8 = vsyncpa [#allocation6], 0 }
   0x2   :  { %9 = vsyncpa [#allocation4], 0  ;;  %s384_s9 = smov [#allocation2]  }
   0x3   :  { %s19_s10 = sshll.u32 %s384_s9, 4  ;;  %s20_s10 = int_to_ptr.vmem [resolvable:$true] %s19_s10 }
   0x4   :  { %s326_s11 = scalar_lea.vmem %s20_s10, 256  ;;  %p331_p1 = scmp.lt.s32.totalorder %s20_s10, %s20_s10 }
   0x5   :  { %p327_p0 = scmp.ne.s32.totalorder %s20_s10, %s326_s11  ;;  %p332_p2 = scmp.lt.s32.totalorder %s326_s11, %s326_s11 }
   0x7   :  { %p333_p3 = por %p332_p2, %p331_p1 }
   0x9   :  { %p334_p4 = pnand %p333_p3, %p327_p0 }
   0xb   :  { %337 = shalt.err (!%p334_p4)
}
   0xc   :  { %s385_s12 = smov 128   ;;  %s386_s13 = smov 8  }
   0xd   :  { %25 = dma.hbm_to_vmem [thread:$0]  %s440_s0, 256, %s20_s10, [#allocation3], %s385_s12, %s385_s12, %s386_s13  }
   0xe   :  { %s387_s16 = smov [#allocation5]  }
   0xf   :  { %s35_s17 = sshll.u32 %s387_s16, 4  ;;  %s36_s17 = int_to_ptr.vmem [resolvable:$true] %s35_s17 }
  0x10   :  { %s346_s18 = scalar_lea.vmem %s36_s17, 64  ;;  %p351_p6 = scmp.lt.s32.totalorder %s36_s17, %s36_s17 }
  0x11   :  { %p347_p5 = scmp.ne.s32.totalorder %s36_s17, %s346_s18  ;;  %p352_p7 = scmp.lt.s32.totalorder %s346_s18, %s346_s18 }
  0x13   :  { %p353_p8 = por %p352_p7, %p351_p6 }
  0x15   :  { %p354_p9 = pnand %p353_p8, %p347_p5 }
  0x17   :  { %357 = shalt.err (!%p354_p9)
}
  0x18   :  { %s388_s19 = smov 32   ;;  %s389_s20 = smov 2  }
  0x19   :  { %41 = dma.hbm_to_vmem [thread:$0]  %s441_s1, 64, %s36_s17, [#allocation6], %s388_s19, %s388_s19, %s389_s20  }
  0x1a   :  { %378 = dma.done.wait [#allocation3], 256  }
  0x1b   :  { %379 = vsyncadd [#allocation3], 4294967040 }
  0x1c   :  { %380 = dma.done.wait [#allocation6], 64  }
  0x1d   :  { %381 = vsyncadd [#allocation6], 4294967232  ;;  %v390_v0 = vmov 0.0   ;;  %vm70_vm0 = vcmask 1043456   ;;  %v60_v1 = vld [vmem:[#allocation2] sm:$0xff]  ;;  %v61_v2 = vld [vmem:[#allocation2 + $0x8] sm:$0xff]  ;;  %v147_v35 = vlaneseq }
  0x1e   :  { %58 = vst [vmem:[#allocation7] sm:$0xff] %v390_v0  ;;  %59 = vst [vmem:[#allocation7 + $0x8] sm:$0xff] %v390_v0  ;;  %v66_v3 = vcombine.high %v60_v1, %v60_v1  ;;  %v67_v4 = vcombine.high %v61_v2, %v61_v2  ;;  %v71_v5 = vsel %vm70_vm0, %v60_v1, -inf  ;;  %v85_v6 = vsel %vm70_vm0, %v61_v2, -inf  ;;  %v62_v42 = vld [vmem:[#allocation5] sm:$0x3] }
  0x1f   :  { %v72_v7 = vrot.slane %v71_v5, 4  ;;  %v86_v8 = vrot.slane %v85_v6, 4  ;;  %v419_v40 = vshrl.u32 %v147_v35, 7  ;;  %v63_v43 = vld [vmem:[#allocation5 + $0x2] sm:$0x3]  ;;  %s392_s0 = smov [#allocation7]  }
  0x20   :  { %v78_v9 = vsel %vm70_vm0, %v66_v3, -inf  ;;  %v92_v10 = vsel %vm70_vm0, %v67_v4, -inf  ;;  %s277_s1 = sshll.u32 %s392_s0, 4  ;;  %vm267_vm5 = vcmp.lt.s32.totalorder %v147_v35, 256  ;;  %s278_s1 = int_to_ptr.vmem [resolvable:$true] %s277_s1 }
  0x21   :  { %v73_v11 = vmax.f32 %v71_v5, %v72_v7  ;;  %v79_v12 = vrot.slane %v78_v9, 4  ;;  %v87_v13 = vmax.f32 %v85_v6, %v86_v8  ;;  %v93_v14 = vrot.slane %v92_v10, 4  ;;  %s358_s23 = scalar_lea.vmem %s278_s1, 256  ;;  %p363_p11 = scmp.lt.s32.totalorder %s278_s1, %s278_s1 }
  0x22   :  { %v151_v41 = vsub.s32 0, %v419_v40  ;;  %v155_v44 = vsub.s32 1, %v419_v40  ;;  %p359_p10 = scmp.ne.s32.totalorder %s278_s1, %s358_s23  ;;  %p364_p12 = scmp.lt.s32.totalorder %s358_s23, %s358_s23 }
  0x23   :  { %v74_v15 = vrot.slane %v73_v11, 2  ;;  %v80_v16 = vmax.f32 %v78_v9, %v79_v12  ;;  %v88_v17 = vrot.slane %v87_v13, 2  ;;  %v94_v18 = vmax.f32 %v92_v10, %v93_v14 }
  0x24   :  { %v152_v45 = vrot.slane %v62_v42, %v151_v41  ;;  %v160_v46 = vrot.slane %v63_v43, %v151_v41  ;;  %v156_v47 = vrot.slane %v62_v42, %v155_v44  ;;  %v164_v48 = vrot.slane %v63_v43, %v155_v44  ;;  %p365_p13 = por %p364_p12, %p363_p11 }
  0x25   :  { %v75_v19 = vmax.f32 %v73_v11, %v74_v15  ;;  %v81_v20 = vrot.slane %v80_v16, 2  ;;  %v89_v21 = vmax.f32 %v87_v13, %v88_v17  ;;  %v95_v22 = vrot.slane %v94_v18, 2 }
  0x26   :  { %vm165_vm1 = vcmp.eq.s32.totalorder %v419_v40, %v152_v45  ;;  %vm167_vm2 = vcmp.eq.s32.totalorder %v419_v40, %v160_v46  ;;  %vm166_vm3 = vcmp.eq.s32.totalorder %v419_v40, %v156_v47  ;;  %vm168_vm4 = vcmp.eq.s32.totalorder %v419_v40, %v164_v48  ;;  %p366_p0 = pnand %p365_p13, %p359_p10 }
  0x27   :  { %v76_v23 = vrot.slane %v75_v19, 1  ;;  %v82_v24 = vmax.f32 %v80_v16, %v81_v20  ;;  %v90_v25 = vrot.slane %v89_v21, 1  ;;  %v96_v26 = vmax.f32 %v94_v18, %v95_v22 }
  0x29   :  { %v77_v27 = vmax.f32 %v75_v19, %v76_v23  ;;  %v83_v28 = vrot.slane %v82_v24, 1  ;;  %v91_v29 = vmax.f32 %v89_v21, %v90_v25  ;;  %v97_v30 = vrot.slane %v96_v26, 1 }
  0x2b   :  { %v84_v31 = vmax.f32 %v82_v24, %v83_v28  ;;  %v98_v32 = vmax.f32 %v96_v26, %v97_v30 }
  0x2d   :  { %v103_v33 = vcombine.low %v77_v27, %v84_v31  ;;  %v104_v34 = vcombine.low %v91_v29, %v98_v32 }
  0x2f   :  { %v107_v36 = vsub.f32 %v60_v1, %v103_v33  ;;  %v108_v37 = vsub.f32 %v61_v2, %v104_v34 }
  0x31   :  { %v109_v38 = vmul.f32 1.442695, %v107_v36  ;;  %v111_v39 = vmul.f32 1.442695, %v108_v37  ;;  %v171_v49 = vcombine.high %v107_v36, %v107_v36  ;;  %v172_v50 = vcombine.high %v108_v37, %v108_v37 }
  0x32   :  { %v175_v52 = vsel %vm165_vm1, %v107_v36, 0.0  ;;  %v177_v56 = vsel %vm167_vm2, %v108_v37, 0.0 }
  0x33   :  { %298 = vpow2.f32 %v109_v38  ;;  %v176_v60 = vsel %vm166_vm3, %v171_v49, 0.0  ;;  %v178_v63 = vsel %vm168_vm4, %v172_v50, 0.0  ;;  %v179_v0 = vsel %vm70_vm0, %v175_v52, 0.0 }
  0x34   :  { %300 = vpow2.f32 %v111_v39  ;;  %v193_v4 = vsel %vm70_vm0, %v177_v56, 0.0  ;;  %v186_v7 = vsel %vm70_vm0, %v176_v60, 0.0  ;;  %v180_v10 = vrot.slane %v179_v0, 4 }
  0x35   :  { %v200_v11 = vsel %vm70_vm0, %v178_v63, 0.0  ;;  %v194_v14 = vrot.slane %v193_v4, 4  ;;  %v187_v17 = vrot.slane %v186_v7, 4 }
  0x36   :  { %v201_v20 = vrot.slane %v200_v11, 4  ;;  %v181_v23 = vadd.f32 %v180_v10, %v179_v0 }
  0x37   :  { %v195_v26 = vadd.f32 %v194_v14, %v193_v4  ;;  %v188_v29 = vadd.f32 %v187_v17, %v186_v7  ;;  %v391_v14 = vmov 1966171168  }
  0x38   :  { %v202_v32 = vadd.f32 %v201_v20, %v200_v11  ;;  %v182_v34 = vrot.slane %v181_v23, 2 }
  0x39   :  { %v196_v37 = vrot.slane %v195_v26, 2  ;;  %v189_v38 = vrot.slane %v188_v29, 2 }
  0x3a   :  { %v203_v39 = vrot.slane %v202_v32, 2  ;;  %v183_v41 = vadd.f32 %v182_v34, %v181_v23 }
  0x3b   :  { %v197_v42 = vadd.f32 %v196_v37, %v195_v26  ;;  %v190_v43 = vadd.f32 %v189_v38, %v188_v29 }
  0x3c   :  { %v204_v44 = vadd.f32 %v203_v39, %v202_v32  ;;  %v184_v45 = vrot.slane %v183_v41, 1 }
  0x3d   :  { %v198_v46 = vrot.slane %v197_v42, 1  ;;  %v191_v47 = vrot.slane %v190_v43, 1 }
  0x3e   :  { %v205_v48 = vrot.slane %v204_v44, 1  ;;  %v185_v49 = vadd.f32 %v184_v45, %v183_v41 }
  0x40   :  { %v299_v51 = vpop.eup %298  ;;  %v206_v56 = vadd.f32 %v205_v48, %v204_v44 }
  0x41   :  { %v301_v53 = vpop.eup %300  ;;  %v115_v54 = vcombine.high %v299_v51, %v299_v51  ;;  %v119_v55 = vsel %vm70_vm0, %v299_v51, 0.0  ;;  %v199_v51 = vadd.f32 %v198_v46, %v197_v42 }
  0x42   :  { %v116_v57 = vcombine.high %v301_v53, %v301_v53  ;;  %v120_v58 = vrot.slane %v119_v55, 4  ;;  %v133_v59 = vsel %vm70_vm0, %v301_v53, 0.0  ;;  %v192_v53 = vadd.f32 %v191_v47, %v190_v43 }
  0x43   :  { %v126_v61 = vsel %vm70_vm0, %v115_v54, 0.0  ;;  %v134_v62 = vrot.slane %v133_v59, 4 }
  0x44   :  { %v121_v1 = vadd.f32 %v120_v58, %v119_v55  ;;  %v127_v2 = vrot.slane %v126_v61, 4  ;;  %v140_v3 = vsel %vm70_vm0, %v116_v57, 0.0 }
  0x45   :  { %v135_v5 = vadd.f32 %v134_v62, %v133_v59  ;;  %v141_v6 = vrot.slane %v140_v3, 4 }
  0x46   :  { %v122_v8 = vrot.slane %v121_v1, 2  ;;  %v128_v9 = vadd.f32 %v127_v2, %v126_v61 }
  0x47   :  { %v136_v12 = vrot.slane %v135_v5, 2  ;;  %v142_v13 = vadd.f32 %v141_v6, %v140_v3 }
  0x48   :  { %v123_v15 = vadd.f32 %v122_v8, %v121_v1  ;;  %v129_v16 = vrot.slane %v128_v9, 2 }
  0x49   :  { %v137_v18 = vadd.f32 %v136_v12, %v135_v5  ;;  %v143_v19 = vrot.slane %v142_v13, 2 }
  0x4a   :  { %v124_v21 = vrot.slane %v123_v15, 1  ;;  %v130_v22 = vadd.f32 %v129_v16, %v128_v9 }
  0x4b   :  { %v138_v24 = vrot.slane %v137_v18, 1  ;;  %v144_v25 = vadd.f32 %v143_v19, %v142_v13 }
  0x4c   :  { %v125_v27 = vadd.f32 %v124_v21, %v123_v15  ;;  %v131_v28 = vrot.slane %v130_v22, 1  ;;  %v250_v15 = vunpack.c.l.s4 %v391_v14 }
  0x4d   :  { %v139_v30 = vadd.f32 %v138_v24, %v137_v18  ;;  %v145_v31 = vrot.slane %v144_v25, 1 }
  0x4e   :  { %v132_v33 = vadd.f32 %v131_v28, %v130_v22  ;;  %302 = vlog2.f32 %v125_v27 }
  0x4f   :  { %v146_v36 = vadd.f32 %v145_v31, %v144_v25  ;;  %304 = vlog2.f32 %v139_v30  ;;  %v251_v25 = vunpack.c.0.s8 %v250_v15 }
  0x50   :  { %306 = vlog2.f32 %v132_v33  ;;  %v245_v33 = vld [vmem:[#allocation7] ss:$8 sm:$0x3] }
  0x51   :  { %308 = vlog2.f32 %v146_v36  ;;  %v254_v30 = vsub.s32 %v251_v25, %v419_v40 }
  0x5b   :  { %v303_v50 = vpop.eup %302 }
  0x5c   :  { %v305_v52 = vpop.eup %304  ;;  %v208_v54 = vmul.f32 0.6931472, %v303_v50 }
  0x5d   :  { %v307_v55 = vpop.eup %306  ;;  %v212_v57 = vmul.f32 0.6931472, %v305_v52 }
  0x5e   :  { %v309_v58 = vpop.eup %308  ;;  %v210_v59 = vmul.f32 0.6931472, %v307_v55  ;;  %v215_v60 = vsub.f32 %v208_v54, %v185_v49 }
  0x5f   :  { %v214_v61 = vmul.f32 0.6931472, %v309_v58  ;;  %v217_v62 = vsub.f32 %v212_v57, %v199_v51 }
  0x60   :  { %v216_v63 = vsub.f32 %v210_v59, %v192_v53  ;;  %v219_v0 = vsub.f32 0.0, %v215_v60 }
  0x61   :  { %v218_v1 = vsub.f32 %v214_v61, %v206_v56  ;;  %v221_v2 = vsub.f32 0.0, %v217_v62 }
  0x62   :  { %v220_v3 = vsub.f32 0.0, %v216_v63  ;;  %v223_v4 = vmul.f32 1.442695, %v219_v0 }
  0x63   :  { %v222_v5 = vsub.f32 0.0, %v218_v1  ;;  %v227_v6 = vmul.f32 1.442695, %v221_v2 }
  0x64   :  { %310 = vpow2.f32 %v223_v4  ;;  %v225_v7 = vmul.f32 1.442695, %v220_v3 }
  0x65   :  { %312 = vpow2.f32 %v227_v6  ;;  %v229_v8 = vmul.f32 1.442695, %v222_v5 }
  0x66   :  { %314 = vpow2.f32 %v225_v7 }
  0x67   :  { %316 = vpow2.f32 %v229_v8 }
  0x71   :  { %v311_v9 = vpop.eup %310 }
  0x72   :  { %v313_v10 = vpop.eup %312  ;;  %v231_v11 = vsub.f32 1.0, %v311_v9 }
  0x73   :  { %v315_v12 = vpop.eup %314  ;;  %v233_v13 = vsub.f32 1.0, %v313_v10 }
  0x74   :  { %v317_v16 = vpop.eup %316  ;;  %v232_v17 = vsub.f32 1.0, %v315_v12  ;;  %v235_v18 = vmul.f32 %v231_v11, %v231_v11 }
  0x75   :  { %v234_v19 = vsub.f32 1.0, %v317_v16  ;;  %v237_v20 = vmul.f32 %v233_v13, %v233_v13 }
  0x76   :  { %v236_v21 = vmul.f32 %v232_v17, %v232_v17  ;;  %v239_v22 = vmul.f32 %v235_v18, %v215_v60 }
  0x77   :  { %v238_v23 = vmul.f32 %v234_v19, %v234_v19  ;;  %v241_v24 = vmul.f32 %v237_v20, %v217_v62 }
  0x78   :  { %v240_v26 = vmul.f32 %v236_v21, %v216_v63 }
  0x79   :  { %v242_v27 = vmul.f32 %v238_v23, %v218_v1  ;;  %v243_v28 = vadd.f32 %v241_v24, %v239_v22 }
  0x7b   :  { %v244_v29 = vadd.f32 %v242_v27, %v240_v26 }
  0x7d   :  { %v248_v31 = vcombine.low %v243_v28, %v244_v29 }
  0x7f   :  { %v255_v32 = vrot.slane %v248_v31, %v254_v30 }
  0x81   :  { %v262_v34 = vrot.slane %v255_v32, %v254_v30 }
  0x83   :  { %v264_v36 = vadd.f32 %v262_v34, %v245_v33 }
  0x85   :  { %269 = vst.msk [vmem:[#allocation7] ss:$8 sm:$0x3] %vm267_vm5, %v264_v36 }
  0x86   :  { %369 = shalt.err (!%p366_p0)
}
  0x87   :  { %280 = dma.vmem_to_hbm [thread:$0]  %s278_s1, 256, %s442_s2, [#allocation4]  }
  0x88   :  { %382 = dma.done.wait [#allocation4], 256  }
  0x89   :  { %383 = vsyncadd [#allocation4], 4294967040 }
  0x8a   :  { %284 = vsyncpa [#allocation3], 1 }
  0x8b   :  { %285 = vsyncpa [#allocation6], 1 }
  0x8c   :  { %286 = vsyncpa [#allocation4], 1 }

</bundles_post_ra>
